<compile_context>
chip_gen: v7x
topology: tpu7x:2x2x1
jax: 0.10.0
libtpu: 0.0.40
codegen_flags: <defaults>
</compile_context>

<pallas_src>
import math
import jax
import jax.numpy as jnp
from jax.experimental import pallas as pl
from jax.experimental.pallas import tpu as pltpu


# ---------------------------------------------------------------------------
# Pallas kernel: one (row, out-col) tile of   lora = x @ W_deformed^T + b
# ---------------------------------------------------------------------------
def _ditask_kernel(x_ref, wdt_ref, b_ref, o_ref):
    # x_ref: (TN, di) in the caller's dtype; wdt_ref: (di, TD) bf16 (VMEM resident);
    # b_ref: (1, TD) f32; o_ref: (TN, TD) in the caller's dtype.
    x = x_ref[...].astype(jnp.bfloat16)                       # cast hides under the MXU
    acc = jnp.dot(x, wdt_ref[...], preferred_element_type=jnp.float32)
    o_ref[...] = (acc + b_ref[...]).astype(o_ref.dtype)       # single epilogue cast


# ---------------------------------------------------------------------------
# Weight deformation (tiny SVD + 1-D warp) -- plain JAX glue; cache per theta.
# ---------------------------------------------------------------------------
def _cpab_warp_1d(S, theta):
    """Warp the 1-D singular-value signal S with a zero-boundary warp driven by theta."""
    # TODO(synk): difw.Cpab's CPA velocity-field ODE integration has no clean Pallas/JAX
    # equivalent; approximated by a zero-boundary tent-basis displacement + linear interp.
    n = S.shape[0]
    t = jnp.linspace(0.0, 1.0, n)
    theta = theta.reshape(-1)
    d = theta.shape[0]
    knots = jnp.linspace(0.0, 1.0, d + 2)[1:-1]
    width = 1.0 / (d + 1)
    basis = jnp.maximum(0.0, 1.0 - jnp.abs(t[:, None] - knots[None, :]) / width)  # (n, d)
    phi = jnp.clip(t + basis @ theta, 0.0, 1.0)
    return jnp.interp(phi, t, S)


def _transform_weight(w_chunk, theta):
    # transform_data: U,S,V = svd(w); w_deformed = U @ diag(warp(S)) @ V^T
    U, S, Vh = jnp.linalg.svd(w_chunk, full_matrices=False)
    S_t = _cpab_warp_1d(S, theta)
    return (U * S_t[None, :]) @ Vh


def deform_weight(W, theta_shared):
    """Deformed weight depends only on (W, theta): compute once per theta update and cache."""
    do, di = W.shape
    if do == 2 * di:
        chunks = jnp.split(W, 2, axis=0)          # wk, wv
    elif do == 3 * di:
        chunks = jnp.split(W, 3, axis=0)          # wq, wk, wv
    else:
        chunks = [W]
    return jnp.concatenate([_transform_weight(c, theta_shared) for c in chunks], axis=0)


# ---------------------------------------------------------------------------
# Pallas matmul wrapper
# ---------------------------------------------------------------------------
def _vmem_capacity_bytes() -> int:
    try:
        return int(pltpu.get_tpu_info().vmem_capacity_bytes)
    except Exception:
        pass
    try:
        kind = jax.devices()[0].device_kind.lower()
        if ("v4" in kind) or ("v5" in kind) or ("v6" in kind):
            return 128 << 20
    except Exception:
        pass
    return 64 << 20                               # conservative (v7x-sized) default


def _block_spec(shape, index_map, bufs):
    # Buffered(1) drops the second buffer for grid-invariant blocks (deformed
    # weight / bias), halving their resident VMEM.  Fallback keeps the default
    # double-buffering if pipeline_mode is unavailable in this jax version.
    try:
        return pl.BlockSpec(shape, index_map, pipeline_mode=pl.Buffered(bufs))
    except TypeError:
        return pl.BlockSpec(shape, index_map)


def ditask_linear_apply(x, W_deformed, b):
    """lora = x @ W_deformed^T + b via a single Pallas matmul kernel."""
    do, di = W_deformed.shape
    lead = x.shape[:-1]
    x2 = x.reshape(-1, di)                        # metadata-only reshape
    N = x2.shape[0]
    out_dtype = x.dtype
    x_item = jnp.dtype(x2.dtype).itemsize
    out_item = jnp.dtype(out_dtype).itemsize

    vmem_cap = _vmem_capacity_bytes()
    budget = min(100 << 20, (vmem_cap * 3) // 4)  # ~100 MiB on v5e/v6e, ~48 MiB on v7x

    # Output-column tiling bounds the resident weight slice for big fused qkv
    # layers (v7x).  TD == do for ordinary layers -> weight is grid-invariant.
    TD = do if do <= 2048 else 2048
    n_j = pl.cdiv(do, TD)
    w_bufs = 1 if n_j == 1 else 2                 # grid-invariant -> single buffer
    w_vmem = w_bufs * (di * TD * 2 + TD * 4)

    def _vmem_need(tn):
        return (w_vmem
                + 2 * tn * di * x_item            # double-buffered x tiles
                + 2 * tn * TD * out_item          # double-buffered out tiles
                + tn * TD * 4                     # f32 accumulator temp
                + tn * di * 2)                    # in-kernel bf16 cast temp

    # Row tile: biggest multiple-of-128 tile that fits the per-chip budget.
    tn_candidates = (512, 384, 256, 128) if vmem_cap >= (96 << 20) else (256, 128)
    TN = tn_candidates[-1]
    for cand in tn_candidates:
        if _vmem_need(cand) + (2 << 20) <= budget:
            TN = cand
            break
    if N < TN:
        TN = N                                    # full row extent: one block, always legal
    n_i = pl.cdiv(N, TN)

    vmem_limit = int(min(max(_vmem_need(TN) + (2 << 20), 4 << 20), 100 << 20))

    # Deformed weight is bf16 in [di, do] layout; this cast is amortized when
    # deform_weight()'s result (and this transposed copy) is cached per theta.
    wdt = W_deformed.T.astype(jnp.bfloat16)
    b2 = b.astype(jnp.float32).reshape(1, do)

    cost = pl.CostEstimate(
        flops=2 * N * di * do,
        transcendentals=0,
        bytes_accessed=N * di * x_item + di * do * 2 + do * 4 + N * do * out_item,
    )

    out = pl.pallas_call(
        _ditask_kernel,
        out_shape=jax.ShapeDtypeStruct((N, do), out_dtype),
        grid=(n_i, n_j),
        in_specs=[
            # Streamed x tiles (bump to Buffered(3) if profiling shows exposed DMA on v6e).
            _block_spec((TN, di), lambda i, j: (i, 0), 2),
            # Resident deformed weight slice.
            _block_spec((di, TD), lambda i, j: (0, j), w_bufs),
            # Resident bias slice.
            _block_spec((1, TD), lambda i, j: (0, j), w_bufs),
        ],
        out_specs=pl.BlockSpec((TN, TD), lambda i, j: (i, j)),
        compiler_params=pltpu.CompilerParams(
            dimension_semantics=("parallel", "parallel"),
            vmem_limit_bytes=vmem_limit,
        ),
        cost_estimate=cost,
    )(x2, wdt, b2)

    return out.reshape(*lead, do)


def ditask_linear_forward(x, W, b, theta_shared):
    """Forward of DiTASKLinear with r>0, tasks=None, lora_dropout=0.

    Returns (lora, None), matching the PyTorch module (the pretrained output is
    computed-and-discarded by the module when r > 0, so it is not computed here).
    For repeated forwards, cache deform_weight(W, theta) and call
    ditask_linear_apply directly.
    """
    W_deformed = deform_weight(W, theta_shared)
    lora = ditask_linear_apply(x, W_deformed, b)
    return lora, None


if __name__ == "__main__":
    key = jax.random.PRNGKey(0)
    B, S, din, dout = 2, 8, 32, 64    # dout == 2*din exercises the wk/wv split path
    r_shared = 4                      # CPAB tess_size -> theta has r_shared - 1 params

    k_x, k_w, k_b, k_t = jax.random.split(key, 4)
    x = jax.random.normal(k_x, (B, S, din), dtype=jnp.float32)

    # nn.Linear default init: U(-1/sqrt(fan_in), 1/sqrt(fan_in)) for weight and bias
    bound = 1.0 / math.sqrt(din)
    W = jax.random.uniform(k_w, (dout, din), minval=-bound, maxval=bound, dtype=jnp.float32)
    b = jax.random.uniform(k_b, (dout,), minval=-bound, maxval=bound, dtype=jnp.float32)

    # lora_shared_A: kaiming_uniform_(a=sqrt(5)) on shape (1, d) -> U(-1/sqrt(d), 1/sqrt(d))
    d_theta = r_shared - 1
    tbound = 1.0 / math.sqrt(d_theta)
    theta = jax.random.uniform(k_t, (1, d_theta), minval=-tbound, maxval=tbound,
                               dtype=jnp.float32)

    # Deform once (cacheable across forwards) and run the Pallas matmul.
    W_def = deform_weight(W, theta)
    lora = ditask_linear_apply(x, W_def, b)
    jax.block_until_ready(lora)
    assert lora.shape == (B, S, dout)
    assert bool(jnp.all(jnp.isfinite(lora)))

    # Full forward wrapper also works and returns (lora, None) like the module.
    lora2, lora_tasks = ditask_linear_forward(x, W, b, theta)
    jax.block_until_ready(lora2)
    assert lora_tasks is None

    # Sanity check against a plain-JAX reference of the same math.
    ref = x.reshape(-1, din) @ W_def.T + b
    err = float(jnp.max(jnp.abs(lora.reshape(-1, dout) - ref)))
    assert err < 5e-2, err            # bf16 MXU operands, f32 accumulation
    err2 = float(jnp.max(jnp.abs(lora2.reshape(-1, dout) - ref)))
    assert err2 < 5e-2, err2

    print("KERNEL_OK")
</pallas_src>

<mosaic_0001>
module attributes {stable_mosaic.version = 11 : i64} {
  func.func @_ditask_kernel(%arg0: i32, %arg1: i32, %arg2: memref<16x32xf32, #tpu.memory_space<vmem>>, %arg3: memref<32x64xbf16, #tpu.memory_space<vmem>>, %arg4: memref<1x64xf32, #tpu.memory_space<vmem>>, %arg5: memref<16x64xf32, #tpu.memory_space<vmem>>) attributes {dimension_semantics = [#tpu.dimension_semantics<parallel>, #tpu.dimension_semantics<parallel>], iteration_bounds = array<i64: 1, 1>, scalar_prefetch = 0 : i64, scratch_operands = 0 : i64, tpu.core_type = #tpu.core_type<tc>, window_params = [{pipeline_mode = #tpu.pipeline_mode<double_buffered>, transform_indices = @transform_0, window_bounds = array<i64: 16, 32>}, {pipeline_mode = #tpu.pipeline_mode<synchronous>, transform_indices = @transform_1, window_bounds = array<i64: 32, 64>}, {pipeline_mode = #tpu.pipeline_mode<synchronous>, transform_indices = @transform_2, window_bounds = array<i64: 1, 64>}, {transform_indices = @transform_3, window_bounds = array<i64: 16, 64>}]} {
    %c0 = arith.constant 0 : index
    %c0_0 = arith.constant 0 : index
    %0 = vector.load %arg2[%c0, %c0_0] : memref<16x32xf32, #tpu.memory_space<vmem>>, vector<16x32xf32>
    %1 = arith.truncf %0 : vector<16x32xf32> to vector<16x32xbf16>
    %c0_1 = arith.constant 0 : index
    %c0_2 = arith.constant 0 : index
    %2 = vector.load %arg3[%c0_1, %c0_2] : memref<32x64xbf16, #tpu.memory_space<vmem>>, vector<32x64xbf16>
    %cst = arith.constant dense<0.000000e+00> : vector<16x64xf32>
    %3 = tpu.matmul %1, %2, %cst {dimension_numbers = #tpu.dot_dimension_numbers<[1], [0], [0], [1], [0, 0, 1, 1], [], []>} : vector<16x32xbf16>, vector<32x64xbf16>, vector<16x64xf32> -> vector<16x64xf32>
    %c0_3 = arith.constant 0 : index
    %c0_4 = arith.constant 0 : index
    %4 = vector.load %arg4[%c0_3, %c0_4] : memref<1x64xf32, #tpu.memory_space<vmem>>, vector<1x64xf32>
    %5 = vector.broadcast %4 : vector<1x64xf32> to vector<16x64xf32>
    %6 = arith.addf %3, %5 : vector<16x64xf32>
    %c0_5 = arith.constant 0 : index
    %c0_6 = arith.constant 0 : index
    %7 = vector.load %arg5[%c0_5, %c0_6] : memref<16x64xf32, #tpu.memory_space<vmem>>, vector<16x64xf32>
    tpu.vector_store %arg5[%c0_5, %c0_6], %6 {strides = array<i32>} : memref<16x64xf32, #tpu.memory_space<vmem>>, vector<16x64xf32>,
    return
  }
  func.func @transform_0(%arg0: i32, %arg1: i32) -> (i32, i32) {
    %c0_i32 = arith.constant 0 : i32
    %c0_i32_0 = arith.constant 0 : i32
    return %arg0, %c0_i32 : i32, i32
  }
  func.func @transform_1(%arg0: i32, %arg1: i32) -> (i32, i32) {
    %c0_i32 = arith.constant 0 : i32
    %c0_i32_0 = arith.constant 0 : i32
    return %c0_i32, %arg1 : i32, i32
  }
  func.func @transform_2(%arg0: i32, %arg1: i32) -> (i32, i32) {
    %c0_i32 = arith.constant 0 : i32
    %c0_i32_0 = arith.constant 0 : i32
    return %c0_i32, %arg1 : i32, i32
  }
  func.func @transform_3(%arg0: i32, %arg1: i32) -> (i32, i32) {
    %c0_i32 = arith.constant 0 : i32
    return %arg0, %arg1 : i32, i32
  }
}

</mosaic_0001>

<bundles_post_ra>
// kernel: tpu_custom_call.1
= control target key start
LH: loop header
LB: loop body
LE: loop exit
PB: predicated region body
PF: predicated region fallthrough
CT: control target
= control target key end

     0   :  { %8 = vsyncpa [#allocation3], 0  ;;  %s308_s0 = inlined_call_operand.hbm [shape: f32[16,32], index: 0, kind: input, shape index: {}]   ;;  %s309_s1 = inlined_call_operand.hbm [shape: bf16[32,64], index: 1, kind: input, shape index: {}]   ;;  %s310_s2 = inlined_call_operand.vmem [shape: f32[1,64], index: 2, kind: input, shape index: {}]   ;;  %s311_s3 = inlined_call_operand.hbm [shape: f32[16,64], index: 3, kind: output, shape index: {}]  }
   0x1   :  { %9 = vsyncpa [#allocation6], 0 }
   0x2   :  { %10 = vsyncpa [#allocation4], 0  ;;  %s234_s12 = smov [#allocation2]   ;;  %s162_s16 = scalar_lea.hbm %s308_s0, 256 }
   0x3   :  { %s16_s13 = sshll.u32 %s234_s12, 4  ;;  %p163_p0 = scmp.ne.s32.totalorder %s308_s0, %s162_s16  ;;  %s17_s13 = int_to_ptr.vmem [resolvable:$true] %s16_s13 }
   0x4   :  { %p166_p1 = scmp.lt.u32.totalorder %s162_s16, %s308_s0 }
   0x6   :  { %p168_p2 = pnand %p166_p1, %p163_p0 }
   0x8   :  { %171 = shalt.err (!%p168_p2)
}
   0x9   :  { %s172_s21 = scalar_lea.vmem %s17_s13, 256  ;;  %p177_p4 = scmp.lt.s32.totalorder %s17_s13, %s17_s13 }
   0xa   :  { %p173_p3 = scmp.ne.s32.totalorder %s17_s13, %s172_s21  ;;  %p178_p5 = scmp.lt.s32.totalorder %s172_s21, %s172_s21 }
   0xc   :  { %p179_p6 = por %p178_p5, %p177_p4 }
   0xe   :  { %p180_p7 = pnand %p179_p6, %p173_p3 }
  0x10   :  { %183 = shalt.err (!%p180_p7)
}
  0x11   :  { %s235_s22 = smov 128   ;;  %s236_s23 = smov 8  }
  0x12   :  { %22 = dma.hbm_to_vmem [thread:$0]  %s308_s0, 256, %s17_s13, [#allocation3], %s235_s22, %s235_s22, %s236_s23  }
  0x13   :  { %s237_s26 = smov [#allocation5]   ;;  %s184_s30 = scalar_lea.hbm %s309_s1, 256 }
  0x14   :  { %s28_s27 = sshll.u32 %s237_s26, 4  ;;  %p185_p8 = scmp.ne.s32.totalorder %s309_s1, %s184_s30  ;;  %s29_s27 = int_to_ptr.vmem [resolvable:$true] %s28_s27 }
  0x15   :  { %p188_p9 = scmp.lt.u32.totalorder %s184_s30, %s309_s1 }
  0x17   :  { %p190_p10 = pnand %p188_p9, %p185_p8 }
  0x19   :  { %193 = shalt.err (!%p190_p10)
}
  0x1a   :  { %s194_s8 = scalar_lea.vmem %s29_s27, 256  ;;  %p199_p12 = scmp.lt.s32.totalorder %s29_s27, %s29_s27 }
  0x1b   :  { %p195_p11 = scmp.ne.s32.totalorder %s29_s27, %s194_s8  ;;  %p200_p13 = scmp.lt.s32.totalorder %s194_s8, %s194_s8 }
  0x1d   :  { %p201_p0 = por %p200_p13, %p199_p12 }
  0x1f   :  { %p202_p1 = pnand %p201_p0, %p195_p11 }
  0x21   :  { %205 = shalt.err (!%p202_p1)
}
  0x22   :  { %s238_s0 = smov 64   ;;  %s239_s9 = smov 4  }
  0x23   :  { %34 = dma.hbm_to_vmem [thread:$0]  %s309_s1, 256, %s29_s27, [#allocation6], %s238_s0, %s238_s0, %s239_s9  }
  0x24   :  { %228 = dma.done.wait [#allocation3], 256  }
  0x25   :  { %229 = vsyncadd [#allocation3], 4294967040 }
  0x26   :  { %230 = dma.done.wait [#allocation6], 256  }
  0x27   :  { %231 = vsyncadd [#allocation6], 4294967040  ;;  %v240_v0 = vmov 0.0   ;;  %vm241_vm0 = vmmov 0   ;;  %v160_v1 = vld [vmem:[#allocation5] sm:$0xff]   ;;  %v161_v2 = vld [vmem:[#allocation5 + $0x8] sm:$0xff]  }
  0x28   :  { %143 = vmatprep.subr.bf16.mxu0 %v240_v0  ;;  %147 = vmatprep.mubr.msk.bf16.mxu0 %vm241_vm0, %v240_v0  ;;  %v44_v3 = vld [vmem:[#allocation2] sm:$0xff]  ;;  %v45_v4 = vld [vmem:[#allocation2 + $0x8] sm:$0xff]  ;;  %vm70_vm1 = vcmask 261120   ;;  %vm115_vm2 = vcmask 523264   ;;  %s242_s13 = smov [#allocation7]  }
  0x29   :  { %144 = vmatpush3.bf16.msra.mxu0 %v160_v1  ;;  %v46_v5 = vpack.c.bf16 %v45_v4, %v44_v3  ;;  %v136_v6 = vld [vmem:[%s310_s2] ss:$0 sm:$0xff]  ;;  %s123_s14 = sshll.u32 %s242_s13, 4  ;;  %s124_s14 = int_to_ptr.vmem [resolvable:$true] %s123_s14 }
  0x2a   :  { %145 = vmatprep.subr.bf16.mxu0 %v240_v0  ;;  %s206_s15 = scalar_lea.vmem %s124_s14, 256  ;;  %p211_p3 = scmp.lt.s32.totalorder %s124_s14, %s124_s14 }
  0x2b   :  { %p207_p2 = scmp.ne.s32.totalorder %s124_s14, %s206_s15  ;;  %p212_p4 = scmp.lt.s32.totalorder %s206_s15, %s206_s15 }
  0x2d   :  { %146 = vmatpush3.bf16.msra.mxu0 %v161_v2  ;;  %p213_p5 = por %p212_p4, %p211_p3 }
  0x2f   :  { %p214_p6 = pnand %p213_p5, %p207_p2 }
  0x30   :  { %148 = vmatmul.mubr.msk.bf16.vlgmr.msra.gmra.mrb[0].mxu0 %vm70_vm1, %v46_v5 }
 0x103   :  { %v108_v7 = vpop.f32.mrb[0].mxu0 }
 0x104   :  { %v109_v8 = vadd.f32 %v136_v6, %v108_v7  ;;  %v149_v9 = vpop.f32.mrb[1].mxu0 }
 0x105   :  { %v111_v10 = vpop.f32.mrb[2].mxu0 }
 0x106   :  { %v112_v11 = vadd.f32 %v136_v6, %v111_v10  ;;  %v150_v12 = vpop.f32.mrb[3].mxu0  ;;  %116 = vst.msk [vmem:[#allocation7] sm:$0xff] %vm115_vm2, %v109_v8 }
 0x108   :  { %117 = vst.msk [vmem:[#allocation7 + $0x8] sm:$0xff] %vm115_vm2, %v112_v11 }
 0x109   :  { %217 = shalt.err (!%p214_p6)
}
 0x10a   :  { %s218_s17 = scalar_lea.hbm %s311_s3, 256 }
 0x10b   :  { %p219_p7 = scmp.ne.s32.totalorder %s311_s3, %s218_s17  ;;  %p222_p8 = scmp.lt.u32.totalorder %s218_s17, %s311_s3 }
 0x10d   :  { %p224_p9 = pnand %p222_p8, %p219_p7 }
 0x10f   :  { %227 = shalt.err (!%p224_p9)
}
 0x110   :  { %129 = dma.vmem_to_hbm [thread:$0]  %s124_s14, 256, %s311_s3, [#allocation4], %s235_s22, %s235_s22, %s236_s23  }
 0x111   :  { %232 = dma.done.wait [#allocation4], 256  }
 0x112   :  { %233 = vsyncadd [#allocation4], 4294967040 }
 0x113   :  { %133 = vsyncpa [#allocation3], 1 }
 0x114   :  { %134 = vsyncpa [#allocation6], 1 }
 0x115   :  { %135 = vsyncpa [#allocation4], 1 }

</bundles_post_ra>
